<compile_context>
chip_gen: v7x
topology: tpu7x:2x2x1
jax: 0.10.0
libtpu: 0.0.40
codegen_flags: <defaults>
</compile_context>

<pallas_src>
import functools

import jax
import jax.numpy as jnp
from jax.experimental import pallas as pl
from jax.experimental.pallas import tpu as pltpu

EPS = 1e-5
_LANE = 128
_TARGET_TILE_LANES = 512          # 512-lane tiles: ~85% of HBM roofline, tiny VMEM
_BF16_WEIGHT_MIN_C = 33           # bf16 MXU operands once the contraction dim fills
_VMEM_LIMIT = 48 * 1024 * 1024    # within v7x's 64 MiB physical; generous on v5e/v6e


def _ceil_to(a, b):
    return (a + b - 1) // b * b


# ---------------------------------------------------------------------------
# Kernels
# ---------------------------------------------------------------------------

def _xstats_kernel(x_ref, stat_ref):
    """Per-tile channel-wise sum / sum-of-squares of x (padding is zero)."""
    x = x_ref[...]
    s = jnp.sum(x, axis=1, keepdims=True)        # (C, 1)
    sq = jnp.sum(x * x, axis=1, keepdims=True)   # (C, 1)
    stat_ref[...] = jnp.concatenate([s, sq], axis=1)[None, :, :]


def _masked_taps_conv(h, w_ref, tap_valid, K):
    """'same' conv as K accumulated MXU dots over roll+masked tap views."""
    P = K // 2
    T = h.shape[-1]
    acc = None
    for k in range(K):
        d = k - P
        if d == 0:
            tap = h
        else:
            rolled = pltpu.roll(h, shift=(-d) % T, axis=1)   # rolled[l] = h[l+d]
            tap = jnp.where(tap_valid[k], rolled, 0.0)
        contrib = jnp.dot(w_ref[k], tap.astype(w_ref.dtype),
                          preferred_element_type=jnp.float32)
        acc = contrib if acc is None else acc + contrib      # tap dies here
    return acc


def _bnrelu_conv1_kernel(x_ref, p_ref, w_ref, h1_ref, stat_ref,
                         *, K, L, L_pad, samples_per_tile, n_real):
    """BN1-affine + ReLU + conv1 on one tile; also emit h1 partial stats.

    x_ref  : (C, TILE)   lane-dense activations (whole padded samples)
    p_ref  : (C, 3)      columns = [scale, shift, conv_bias]
    w_ref  : (K, C, C)   w_ref[k] = W[:, :, k]  (C_out, C_in)
    h1_ref : (C, TILE)
    stat_ref: (1, C, 2)  masked sum / sumsq of h1 over valid lanes
    """
    P = K // 2
    T = x_ref.shape[1]

    # --- hoisted lane bookkeeping (once per tile) ---
    lane = jax.lax.broadcasted_iota(jnp.int32, (1, T), 1)
    l_in = lane % L_pad                                        # pos within sample
    samp = pl.program_id(0) * samples_per_tile + lane // L_pad
    lane_valid = jnp.logical_and(l_in < L, samp < n_real)      # real data lanes
    tap_valid = [jnp.logical_and(l_in + d >= 0, l_in + d < L)
                 for d in range(-P, P + 1)]

    scale = p_ref[:, 0:1]
    shift = p_ref[:, 1:2]
    bias = p_ref[:, 2:3]

    h = jnp.maximum(x_ref[...] * scale + shift, 0.0)           # BN1 affine + ReLU
    h1 = _masked_taps_conv(h, w_ref, tap_valid, K) + bias      # conv1
    h1_ref[...] = h1

    hv = jnp.where(lane_valid, h1, 0.0)                        # mask pad lanes/samples
    s = jnp.sum(hv, axis=1, keepdims=True)
    sq = jnp.sum(hv * hv, axis=1, keepdims=True)
    stat_ref[...] = jnp.concatenate([s, sq], axis=1)[None, :, :]


def _bnrelu_conv2_kernel(h1_ref, x_ref, p_ref, w_ref, o_ref, *, K, L, L_pad):
    """BN2-affine + ReLU + conv2 + residual add on one tile."""
    P = K // 2
    T = h1_ref.shape[1]

    lane = jax.lax.broadcasted_iota(jnp.int32, (1, T), 1)
    l_in = lane % L_pad
    tap_valid = [jnp.logical_and(l_in + d >= 0, l_in + d < L)
                 for d in range(-P, P + 1)]

    scale = p_ref[:, 0:1]
    shift = p_ref[:, 1:2]
    bias = p_ref[:, 2:3]

    h = jnp.maximum(h1_ref[...] * scale + shift, 0.0)
    out = _masked_taps_conv(h, w_ref, tap_valid, K) + bias + x_ref[...]
    o_ref[...] = out.astype(o_ref.dtype)


# ---------------------------------------------------------------------------
# Wrapper
# ---------------------------------------------------------------------------

def residual_block_pallas(x, params):
    """x: (N, C, L) float32; params: dict of BN/conv parameters (PyTorch shapes)."""
    N, C, L = x.shape
    K = params["w1"].shape[-1]
    assert K % 2 == 1, "module uses padding = K//2 ('same'), which requires odd K"

    # ---- layout / padding (wrapper-side plumbing only) ----
    L_pad = _ceil_to(L, _LANE)                       # lane-align every sample
    spt = max(1, _TARGET_TILE_LANES // L_pad)        # whole samples per tile
    tile = spt * L_pad                               # multiple of 128 lanes
    N_pad = _ceil_to(max(N, 1), spt)
    num_tiles = N_pad // spt
    NLp = N_pad * L_pad
    C_pad = _ceil_to(C, 8)                           # sublane-align channels

    x2 = jnp.zeros((C_pad, N_pad, L_pad), jnp.float32)
    x2 = x2.at[:C, :N, :L].set(jnp.transpose(x, (1, 0, 2)))
    x2 = x2.reshape(C_pad, NLp)                      # lane-dense (C, N*L) slab

    w_dtype = jnp.bfloat16 if C > _BF16_WEIGHT_MIN_C - 1 else jnp.float32

    def pad_w(w):
        # (C_out, C_in, K) -> (K, C_out_pad, C_in_pad); cast ONCE in the wrapper.
        wp = jnp.zeros((K, C_pad, C_pad), jnp.float32)
        wp = wp.at[:, :C, :C].set(jnp.transpose(w, (2, 0, 1)))
        return wp.astype(w_dtype)

    def pad_c(v):
        return jnp.zeros((C_pad,), jnp.float32).at[:C].set(v.astype(jnp.float32))

    w1, w2 = pad_w(params["w1"]), pad_w(params["w2"])
    g1, b1 = pad_c(params["g1"]), pad_c(params["b1"])
    g2, b2 = pad_c(params["g2"]), pad_c(params["b2"])
    c1, c2 = pad_c(params["c1"]), pad_c(params["c2"])

    count = float(N * L)                             # BN stats over real (N, L) only

    cparams = pltpu.CompilerParams(
        dimension_semantics=("parallel",),           # shard tiles across TCs (v7x)
        vmem_limit_bytes=_VMEM_LIMIT,
    )

    xt_spec = pl.BlockSpec((C_pad, tile), lambda i: (0, i))
    p_spec = pl.BlockSpec((C_pad, 3), lambda i: (0, 0))
    w_spec = pl.BlockSpec((K, C_pad, C_pad), lambda i: (0, 0, 0))
    stat_spec = pl.BlockSpec((1, C_pad, 2), lambda i: (i, 0, 0))
    stat_shape = jax.ShapeDtypeStruct((num_tiles, C_pad, 2), jnp.float32)

    # ---- pass 1: per-tile sum / sumsq of x (BN1 batch statistics) ----
    xstats = pl.pallas_call(
        _xstats_kernel,
        out_shape=stat_shape,
        grid_spec=pltpu.PrefetchScalarGridSpec(
            num_scalar_prefetch=0, grid=(num_tiles,),
            in_specs=[xt_spec], out_specs=stat_spec),
        compiler_params=cparams,
    )(x2)

    def fold(stats, gamma, beta, bias):
        # Tiny C-length folding of reduced sums into BN scale/shift (+ conv bias),
        # packed into one (C, 3) operand so each grid step DMAs a single array.
        s = jnp.sum(stats[:, :, 0], axis=0)
        sq = jnp.sum(stats[:, :, 1], axis=0)
        mean = s / count
        var = jnp.maximum(sq / count - mean * mean, 0.0)
        scale = gamma / jnp.sqrt(var + EPS)
        shift = beta - mean * scale
        return jnp.stack([scale, shift, bias], axis=1)   # (C_pad, 3)

    p1 = fold(xstats, g1, b1, c1)

    # ---- pass 2: BN1 + ReLU + conv1 -> h1 (to HBM) + per-tile h1 stats ----
    h1, h1stats = pl.pallas_call(
        functools.partial(_bnrelu_conv1_kernel, K=K, L=L, L_pad=L_pad,
                          samples_per_tile=spt, n_real=N),
        out_shape=(jax.ShapeDtypeStruct((C_pad, NLp), jnp.float32), stat_shape),
        grid_spec=pltpu.PrefetchScalarGridSpec(
            num_scalar_prefetch=0, grid=(num_tiles,),
            in_specs=[xt_spec, p_spec, w_spec],
            out_specs=(xt_spec, stat_spec)),
        compiler_params=cparams,
    )(x2, p1, w1)

    p2 = fold(h1stats, g2, b2, c2)

    # ---- pass 3: BN2 + ReLU + conv2 + residual add ----
    out2 = pl.pallas_call(
        functools.partial(_bnrelu_conv2_kernel, K=K, L=L, L_pad=L_pad),
        out_shape=jax.ShapeDtypeStruct((C_pad, NLp), jnp.float32),
        grid_spec=pltpu.PrefetchScalarGridSpec(
            num_scalar_prefetch=0, grid=(num_tiles,),
            in_specs=[xt_spec, xt_spec, p_spec, w_spec],
            out_specs=xt_spec),
        compiler_params=cparams,
    )(h1, x2, p2, w2)

    out = out2.reshape(C_pad, N_pad, L_pad)[:C, :N, :L]
    return jnp.transpose(out, (1, 0, 2))             # back to PyTorch NCL


# ---------------------------------------------------------------------------
# Pure-JAX reference (training-mode BN, mirrors the PyTorch forward)
# ---------------------------------------------------------------------------

def residual_block_ref(x, params):
    def bn_relu_conv(h, g, b, w, c):
        mean = h.mean(axis=(0, 2), keepdims=True)
        var = ((h - mean) ** 2).mean(axis=(0, 2), keepdims=True)
        hn = (h - mean) / jnp.sqrt(var + EPS) * g.reshape(1, -1, 1) + b.reshape(1, -1, 1)
        hn = jnp.maximum(hn, 0.0)
        out = jax.lax.conv_general_dilated(
            hn, w, window_strides=(1,), padding="SAME",
            dimension_numbers=("NCH", "OIH", "NCH"))
        return out + c.reshape(1, -1, 1)

    out = bn_relu_conv(x, params["g1"], params["b1"], params["w1"], params["c1"])
    out = bn_relu_conv(out, params["g2"], params["b2"], params["w2"], params["c2"])
    return out + x


if __name__ == "__main__":
    N, C, L, K = 2, 4, 16, 3

    key = jax.random.PRNGKey(0)
    kx, kw1, kw2, kc1, kc2, kg1, kb1, kg2, kb2 = jax.random.split(key, 9)

    x = jax.random.normal(kx, (N, C, L), dtype=jnp.float32)

    fan_in = C * K
    bound = 1.0 / jnp.sqrt(fan_in)
    params = {
        # BatchNorm1d affine params (deterministically randomized around defaults)
        "g1": 1.0 + 0.1 * jax.random.normal(kg1, (C,), dtype=jnp.float32),
        "b1": 0.1 * jax.random.normal(kb1, (C,), dtype=jnp.float32),
        "g2": 1.0 + 0.1 * jax.random.normal(kg2, (C,), dtype=jnp.float32),
        "b2": 0.1 * jax.random.normal(kb2, (C,), dtype=jnp.float32),
        # Conv1d weights (C_out, C_in, K) and biases (C_out,)
        "w1": jax.random.uniform(kw1, (C, C, K), jnp.float32, -bound, bound),
        "c1": jax.random.uniform(kc1, (C,), jnp.float32, -bound, bound),
        "w2": jax.random.uniform(kw2, (C, C, K), jnp.float32, -bound, bound),
        "c2": jax.random.uniform(kc2, (C,), jnp.float32, -bound, bound),
    }

    out = jax.block_until_ready(residual_block_pallas(x, params))
    ref = jax.block_until_ready(residual_block_ref(x, params))

    assert out.shape == (N, C, L) and out.dtype == jnp.float32
    assert jnp.allclose(out, ref, atol=1e-4, rtol=1e-4), (
        f"max abs err {jnp.max(jnp.abs(out - ref))}")
    print("KERNEL_OK")
</pallas_src>

<mosaic_0001>
module attributes {stable_mosaic.version = 11 : i64} {
  func.func @_xstats_kernel(%arg0: i32, %arg1: memref<8x512xf32, #tpu.memory_space<vmem>>, %arg2: memref<1x8x2xf32, #tpu.memory_space<vmem>>) attributes {dimension_semantics = [#tpu.dimension_semantics<parallel>], iteration_bounds = array<i64: 1>, scalar_prefetch = 0 : i64, scratch_operands = 0 : i64, tpu.core_type = #tpu.core_type<tc>, window_params = [{transform_indices = @transform_0, window_bounds = array<i64: 8, 512>}, {transform_indices = @transform_1, window_bounds = array<i64: 1, 8, 2>}]} {
    %c0 = arith.constant 0 : index
    %c0_0 = arith.constant 0 : index
    %0 = vector.load %arg1[%c0, %c0_0] : memref<8x512xf32, #tpu.memory_space<vmem>>, vector<8x512xf32>
    %cst = arith.constant dense<0.000000e+00> : vector<8xf32>
    %1 = vector.multi_reduction <add>, %0, %cst [1] : vector<8x512xf32> to vector<8xf32>
    %2 = vector.shape_cast %1 : vector<8xf32> to vector<8x1xf32>
    %3 = arith.mulf %0, %0 : vector<8x512xf32>
    %cst_1 = arith.constant dense<0.000000e+00> : vector<8xf32>
    %4 = vector.multi_reduction <add>, %3, %cst_1 [1] : vector<8x512xf32> to vector<8xf32>
    %5 = vector.shape_cast %4 : vector<8xf32> to vector<8x1xf32>
    %6 = tpu.concatenate %2, %5 in 1 : vector<8x1xf32>, vector<8x1xf32> -> vector<8x2xf32>
    %7 = vector.shape_cast %6 : vector<8x2xf32> to vector<1x8x2xf32>
    %c0_2 = arith.constant 0 : index
    %c0_3 = arith.constant 0 : index
    %c0_4 = arith.constant 0 : index
    %8 = vector.load %arg2[%c0_2, %c0_3, %c0_4] : memref<1x8x2xf32, #tpu.memory_space<vmem>>, vector<1x8x2xf32>
    tpu.vector_store %arg2[%c0_2, %c0_3, %c0_4], %7 {strides = array<i32>} : memref<1x8x2xf32, #tpu.memory_space<vmem>>, vector<1x8x2xf32>,
    return
  }
  func.func @transform_0(%arg0: i32) -> (i32, i32) {
    %c0_i32 = arith.constant 0 : i32
    %c0_i32_0 = arith.constant 0 : i32
    return %c0_i32, %arg0 : i32, i32
  }
  func.func @transform_1(%arg0: i32) -> (i32, i32, i32) {
    %c0_i32 = arith.constant 0 : i32
    %c0_i32_0 = arith.constant 0 : i32
    %c0_i32_1 = arith.constant 0 : i32
    return %arg0, %c0_i32, %c0_i32_0 : i32, i32, i32
  }
}

</mosaic_0001>

<bundles_post_ra>
// kernel: tpu_custom_call.1
= control target key start
LH: loop header
LB: loop body
LE: loop exit
PB: predicated region body
PF: predicated region fallthrough
CT: control target
= control target key end

     0   :  { %6 = vsyncpa [#allocation3], 0  ;;  %s72_s6 = smov [#allocation2]   ;;  %s98_s0 = inlined_call_operand.hbm [shape: f32[8,512], index: 0, kind: input, shape index: {}]   ;;  %s99_s1 = inlined_call_operand.vmem [shape: f32[1,8,2], index: 1, kind: output, shape index: {}]  }
   0x1   :  { %s13_s7 = sshll.u32 %s72_s6, 4  ;;  %s48_s10 = scalar_lea.hbm %s98_s0, 512  ;;  %s14_s7 = int_to_ptr.vmem [resolvable:$true] %s13_s7 }
   0x2   :  { %p49_p0 = scmp.ne.s32.totalorder %s98_s0, %s48_s10  ;;  %p52_p1 = scmp.lt.u32.totalorder %s48_s10, %s98_s0 }
   0x4   :  { %p54_p2 = pnand %p52_p1, %p49_p0 }
   0x6   :  { %57 = shalt.err (!%p54_p2)
}
   0x7   :  { %s58_s15 = scalar_lea.vmem %s14_s7, 512  ;;  %p63_p4 = scmp.lt.s32.totalorder %s14_s7, %s14_s7 }
   0x8   :  { %p59_p3 = scmp.ne.s32.totalorder %s14_s7, %s58_s15  ;;  %p64_p5 = scmp.lt.s32.totalorder %s58_s15, %s58_s15 }
   0xa   :  { %p65_p6 = por %p64_p5, %p63_p4 }
   0xc   :  { %p66_p7 = pnand %p65_p6, %p59_p3 }
   0xe   :  { %69 = shalt.err (!%p66_p7)
}
   0xf   :  { %16 = dma.hbm_to_vmem [thread:$0]  %s98_s0, 512, %s14_s7, [#allocation3]  }
  0x10   :  { %70 = dma.done.wait [#allocation3], 512  }
  0x11   :  { %71 = vsyncadd [#allocation3], 4294966784  ;;  %v20_v0 = vld [vmem:[#allocation2] sm:$0xff]  ;;  %v21_v1 = vld [vmem:[#allocation2 + $0x8] sm:$0xff]  ;;  %vm38_vm0 = vcmask 7168   ;;  %vm40_vm1 = vcmask 15360  }
  0x12   :  { %v22_v2 = vld [vmem:[#allocation2 + $0x10] sm:$0xff]  ;;  %v24_v3 = vadd.f32 %v21_v1, %v20_v0  ;;  %v29_v4 = vmul.f32 %v20_v0, %v20_v0  ;;  %v30_v5 = vmul.f32 %v21_v1, %v21_v1  ;;  %v23_v7 = vld [vmem:[#allocation2 + $0x18] sm:$0xff] }
  0x13   :  { %v31_v6 = vmul.f32 %v22_v2, %v22_v2  ;;  %v32_v9 = vmul.f32 %v23_v7, %v23_v7 }
  0x14   :  { %v25_v8 = vadd.f32 %v24_v3, %v22_v2  ;;  %v33_v10 = vadd.f32 %v30_v5, %v29_v4 }
  0x16   :  { %v26_v11 = vadd.f32 %v25_v8, %v23_v7  ;;  %v34_v12 = vadd.f32 %v33_v10, %v31_v6 }
  0x18   :  { %27 = vadd.xlane.f32.xlu0 %v26_v11  ;;  %v35_v13 = vadd.f32 %v34_v12, %v32_v9 }
  0x1c   :  { %36 = vadd.xlane.f32.xlu0 %v35_v13 }
  0xa5   :  { %v28_v14 = vpop.xlane.xlu0 %27 }
  0xa9   :  { %v37_v15 = vpop.xlane.xlu0 %36 }
  0xaa   :  { %v39_v16 = vsel %vm38_vm0, %v28_v14, %v37_v15 }
  0xab   :  { %41 = vst.msk [vmem:[%s99_s1] sm:$0xff] %vm40_vm1, %v39_v16 }
  0xac   :  { %46 = vsyncpa [#allocation3], 1 }

</bundles_post_ra>
